<compile_context>
chip_gen: v6e
topology: v6e:2x2x1
jax: 0.10.0
libtpu: 0.0.40
codegen_flags: <defaults>
</compile_context>

<pallas_src>
import jax
import jax.numpy as jnp
from jax.experimental import pallas as pl
from jax.experimental.pallas import tpu as pltpu

N_HEADS = 4
N_QKV = 8                     # per-head head dim D
N_EMBED = N_HEADS * N_QKV     # 32
T = 8                         # sequence length
B = 2                         # batch of sequences (small test shape)


def attention_head_kernel(x_ref, wqkv_ref, bqkv_ref, out_ref):
    """x_ref: (BB, T, E), wqkv_ref: (E, 3D), bqkv_ref: (1, 3D), out_ref: (BB, T, D)."""
    bb, t, e = x_ref.shape
    d = out_ref.shape[-1]

    # Fused q/k/v projection: one matmul over all BB*T tokens.
    x2 = x_ref[...].reshape(bb * t, e)
    qkv = jnp.dot(x2, wqkv_ref[...], preferred_element_type=jnp.float32) + bqkv_ref[...]
    qkv = qkv.reshape(bb, t, 3 * d)
    q = qkv[..., 0:d]          # 1/sqrt(d) already folded into Wq / bq
    k = qkv[..., d:2 * d]
    v = qkv[..., 2 * d:3 * d]

    # Attention logits (batched over the BB sequences in this tile).
    logits = jnp.einsum('btd,bsd->bts', q, k, preferred_element_type=jnp.float32)
    # TODO(synk): apply causal mask here when params.masked is True.

    # Numerically stable softmax; reciprocal goes to the EUP slot.
    m = jnp.max(logits, axis=-1, keepdims=True)
    e_ = jnp.exp(logits - m)
    denom = jnp.sum(e_, axis=-1, keepdims=True)
    probs = e_ * pl.reciprocal(denom, approx=False)

    out_ref[...] = jnp.einsum('bts,bsd->btd', probs, v,
                              preferred_element_type=jnp.float32).astype(out_ref.dtype)


def pack_params(wq, bq, wk, bk, wv, bv):
    """One-time (non-jit) prep: fold 1/sqrt(D) into Wq/bq and fuse q|k|v column-wise."""
    d = wq.shape[1]
    scale = 1.0 / (d ** 0.5)
    wqkv = jnp.concatenate([wq * scale, wk, wv], axis=1)              # (E, 3D)
    bqkv = jnp.concatenate([bq * scale, bk, bv], axis=0).reshape(1, 3 * d)
    return wqkv, bqkv


def attention_head(x, wqkv, bqkv, *, block_b=128):
    """x: (B, T, E) float32 -> (B, T, D) float32."""
    b, t, e = x.shape
    d = wqkv.shape[1] // 3

    bb = min(block_b, b)
    pad = (-b) % bb
    if pad:
        x = jnp.concatenate([x, jnp.zeros((pad, t, e), x.dtype)], axis=0)
    bp = b + pad
    n_tiles = bp // bb
    out_shape = jax.ShapeDtypeStruct((bp, t, d), jnp.float32)

    if n_tiles == 1:
        # Single tile covers everything: no grid, no pipeline overhead.
        out = pl.pallas_call(
            attention_head_kernel,
            out_shape=out_shape,
        )(x, wqkv, bqkv)
    else:
        # Batched path: tile the batch axis; weights stay resident via constant maps.
        out = pl.pallas_call(
            attention_head_kernel,
            out_shape=out_shape,
            grid=(n_tiles,),
            in_specs=[
                pl.BlockSpec((bb, t, e), lambda i: (i, 0, 0)),
                pl.BlockSpec((e, 3 * d), lambda i: (0, 0)),
                pl.BlockSpec((1, 3 * d), lambda i: (0, 0)),
            ],
            out_specs=pl.BlockSpec((bb, t, d), lambda i: (i, 0, 0)),
            compiler_params=pltpu.CompilerParams(
                dimension_semantics=("parallel",)),
        )(x, wqkv, bqkv)

    return out[:b]


attention_head_jit = jax.jit(attention_head, static_argnames=("block_b",))


def reference(x, wq, bq, wk, bk, wv, bv):
    q = x @ wq + bq
    k = x @ wk + bk
    v = x @ wv + bv
    logits = jnp.einsum('btd,bsd->bts', q, k) / (N_QKV ** 0.5)
    probs = jax.nn.softmax(logits, axis=-1)
    return jnp.einsum('bts,bsd->btd', probs, v)


if __name__ == "__main__":
    key = jax.random.PRNGKey(0)
    kx, k0, k1, k2, k3, k4, k5 = jax.random.split(key, 7)

    x = jax.random.normal(kx, (B, T, N_EMBED), dtype=jnp.float32)
    s = 0.05
    wq = s * jax.random.normal(k0, (N_EMBED, N_QKV), dtype=jnp.float32)
    bq = s * jax.random.normal(k1, (N_QKV,), dtype=jnp.float32)
    wk = s * jax.random.normal(k2, (N_EMBED, N_QKV), dtype=jnp.float32)
    bk = s * jax.random.normal(k3, (N_QKV,), dtype=jnp.float32)
    wv = s * jax.random.normal(k4, (N_EMBED, N_QKV), dtype=jnp.float32)
    bv = s * jax.random.normal(k5, (N_QKV,), dtype=jnp.float32)

    wqkv, bqkv = pack_params(wq, bq, wk, bk, wv, bv)   # one-time, outside jit

    y = attention_head_jit(x, wqkv, bqkv)
    y = jax.block_until_ready(y)

    y_ref = reference(x, wq, bq, wk, bk, wv, bv)
    assert y.shape == (B, T, N_QKV)
    assert jnp.allclose(y, y_ref, atol=1e-4, rtol=1e-4), "mismatch vs reference"
    print("KERNEL_OK")
</pallas_src>

<mosaic_0001>
module attributes {stable_mosaic.version = 11 : i64} {
  func.func @attention_head_kernel(%arg0: memref<2x8x32xf32, #tpu.memory_space<vmem>>, %arg1: memref<32x24xf32, #tpu.memory_space<vmem>>, %arg2: memref<1x24xf32, #tpu.memory_space<vmem>>, %arg3: memref<2x8x8xf32, #tpu.memory_space<vmem>>) attributes {dimension_semantics = [], scalar_prefetch = 0 : i64, scratch_operands = 0 : i64, tpu.core_type = #tpu.core_type<tc>} {
    %c0 = arith.constant 0 : index
    %c0_0 = arith.constant 0 : index
    %c0_1 = arith.constant 0 : index
    %0 = vector.load %arg0[%c0, %c0_0, %c0_1] : memref<2x8x32xf32, #tpu.memory_space<vmem>>, vector<2x8x32xf32>
    %1 = vector.shape_cast %0 : vector<2x8x32xf32> to vector<16x32xf32>
    %c0_2 = arith.constant 0 : index
    %c0_3 = arith.constant 0 : index
    %2 = vector.load %arg1[%c0_2, %c0_3] : memref<32x24xf32, #tpu.memory_space<vmem>>, vector<32x24xf32>
    %cst = arith.constant dense<0.000000e+00> : vector<16x24xf32>
    %3 = tpu.matmul %1, %2, %cst {dimension_numbers = #tpu.dot_dimension_numbers<[1], [0], [0], [1], [0, 0, 1, 1], [], []>} : vector<16x32xf32>, vector<32x24xf32>, vector<16x24xf32> -> vector<16x24xf32>
    %c0_4 = arith.constant 0 : index
    %c0_5 = arith.constant 0 : index
    %4 = vector.load %arg2[%c0_4, %c0_5] : memref<1x24xf32, #tpu.memory_space<vmem>>, vector<1x24xf32>
    %5 = vector.broadcast %4 : vector<1x24xf32> to vector<16x24xf32>
    %6 = arith.addf %3, %5 : vector<16x24xf32>
    %7 = vector.shape_cast %6 : vector<16x24xf32> to vector<2x8x24xf32>
    %8 = vector.extract_strided_slice %7 {offsets = [0, 0, 0], sizes = [2, 8, 8], strides = [1, 1, 1]} : vector<2x8x24xf32> to vector<2x8x8xf32>
    %9 = vector.extract_strided_slice %7 {offsets = [0, 0, 8], sizes = [2, 8, 8], strides = [1, 1, 1]} : vector<2x8x24xf32> to vector<2x8x8xf32>
    %10 = vector.extract_strided_slice %7 {offsets = [0, 0, 16], sizes = [2, 8, 8], strides = [1, 1, 1]} : vector<2x8x24xf32> to vector<2x8x8xf32>
    "tpu.trace_start"() <{level = 10 : i32, message = "btd,bsd->bts"}> : () -> ()
    %cst_6 = arith.constant dense<0.000000e+00> : vector<2x8x8xf32>
    %11 = tpu.matmul %8, %9, %cst_6 {dimension_numbers = #tpu.dot_dimension_numbers<[2], [2], [1], [1], [0, 0, 0, 1, 1, 1], [0], [0]>} : vector<2x8x8xf32>, vector<2x8x8xf32>, vector<2x8x8xf32> -> vector<2x8x8xf32>
    "tpu.trace_stop"() : () -> ()
    %cst_7 = arith.constant dense<0xFF800000> : vector<2x8xf32>
    %12 = vector.multi_reduction <maximumf>, %11, %cst_7 [2] : vector<2x8x8xf32> to vector<2x8xf32>
    %13 = vector.shape_cast %12 : vector<2x8xf32> to vector<2x8x1xf32>
    %14 = vector.broadcast %13 : vector<2x8x1xf32> to vector<2x8x8xf32>
    %15 = arith.subf %11, %14 : vector<2x8x8xf32>
    %16 = math.exp %15 : vector<2x8x8xf32>
    %cst_8 = arith.constant dense<0.000000e+00> : vector<2x8xf32>
    %17 = vector.multi_reduction <add>, %16, %cst_8 [2] : vector<2x8x8xf32> to vector<2x8xf32>
    %18 = vector.shape_cast %17 : vector<2x8xf32> to vector<2x8x1xf32>
    %19 = tpu.reciprocal %18 : vector<2x8x1xf32> -> vector<2x8x1xf32>
    %20 = vector.broadcast %19 : vector<2x8x1xf32> to vector<2x8x8xf32>
    %21 = arith.mulf %16, %20 : vector<2x8x8xf32>
    "tpu.trace_start"() <{level = 10 : i32, message = "bts,bsd->btd"}> : () -> ()
    %cst_9 = arith.constant dense<0.000000e+00> : vector<2x8x8xf32>
    %22 = tpu.matmul %21, %10, %cst_9 {dimension_numbers = #tpu.dot_dimension_numbers<[2], [1], [1], [2], [0, 0, 0, 1, 1, 2], [0], [0]>} : vector<2x8x8xf32>, vector<2x8x8xf32>, vector<2x8x8xf32> -> vector<2x8x8xf32>
    "tpu.trace_stop"() : () -> ()
    %c0_10 = arith.constant 0 : index
    %c0_11 = arith.constant 0 : index
    %c0_12 = arith.constant 0 : index
    %23 = vector.load %arg3[%c0_10, %c0_11, %c0_12] : memref<2x8x8xf32, #tpu.memory_space<vmem>>, vector<2x8x8xf32>
    tpu.vector_store %arg3[%c0_10, %c0_11, %c0_12], %22 {strides = array<i32>} : memref<2x8x8xf32, #tpu.memory_space<vmem>>, vector<2x8x8xf32>,
    return
  }
}

</mosaic_0001>

<bundles_post_ra>
// kernel: attention_head.1
= control target key start
LH: loop header
LB: loop body
LE: loop exit
PB: predicated region body
PF: predicated region fallthrough
CT: control target
= control target key end

     0   :  { %vm28_vm0 = vcmask 261120   ;;  %s615_s0 = inlined_call_operand.vmem [shape: f32[2,8,32], index: 0, kind: input, shape index: {}]   ;;  %s616_s1 = inlined_call_operand.vmem [shape: f32[32,24], index: 1, kind: input, shape index: {}]   ;;  %s617_s2 = inlined_call_operand.vmem [shape: f32[1,24], index: 2, kind: input, shape index: {}]   ;;  %s618_s3 = inlined_call_operand.hbm [shape: f32[2,8,8], index: 3, kind: output, shape index: {}]  }
   0x1   :  { %v20_v0 = vld [vmem:[%s616_s1 + $0x18] sm:$0xff]  ;;  %v19_v1 = vld [vmem:[%s616_s1 + $0x10] sm:$0xff]  ;;  %v15_v2 = vld [vmem:[%s615_s0] sm:$0xff] }
   0x2   :  { %480 = vmatprep.subr.mxu0 %v20_v0  ;;  %v18_v3 = vld [vmem:[%s616_s1 + $0x8] sm:$0xff]  ;;  %488 = vmatprep.mubr.msk.f32.mxu0 %vm28_vm0, %v15_v2 }
   0x3   :  { %481 = vmatpush3.msra.mxu0 %v20_v0 }
   0x4   :  { %8 = vsyncpa [#allocation3], 0  ;;  %482 = vmatprep.subr.mxu0 %v19_v1  ;;  %v17_v4 = vld [vmem:[%s616_s1] sm:$0xff]  ;;  %v16_v5 = vld [vmem:[%s615_s0 + $0x8] sm:$0xff]  ;;  %v548_v6 = vmov 0.0   ;;  %vm549_vm1 = vmmov 0  }
   0x5   :  { %483 = vmatpush3.msra.mxu0 %v19_v1  ;;  %491 = vmatprep.subr.mxu1 %v548_v6  ;;  %v457_v8 = vld [vmem:[%s617_s2] ss:$0 sm:$0xff]  ;;  %s550_s25 = smov 120   ;;  %vm113_vm2 = vcmask 64512   ;;  %s551_s0 = smov 112  }
   0x6   :  { %484 = vmatprep.subr.mxu0 %v18_v3  ;;  %493 = vmatprep.mubr.msk.f32.mxu1 %vm549_vm1, %v548_v6  ;;  %s552_s2 = smov [#allocation2]  }
   0x7   :  { %485 = vmatpush3.msra.mxu0 %v18_v3  ;;  %s446_s26 = sshll.u32 %s552_s2, 4  ;;  %s447_s26 = int_to_ptr.vmem [resolvable:$true] %s446_s26 }
   0x8   :  { %486 = vmatprep.subr.mxu0 %v17_v4  ;;  %s526_s27 = scalar_lea.vmem %s447_s26, 256  ;;  %p531_p1 = scmp.lt.s32.totalorder %s447_s26, %s447_s26 }
   0x9   :  { %487 = vmatpush3.msra.mxu0 %v17_v4  ;;  %p527_p0 = scmp.ne.s32.totalorder %s447_s26, %s526_s27  ;;  %p532_p2 = scmp.lt.s32.totalorder %s526_s27, %s526_s27 }
   0xa   :  { %489 = vmatmul.mubr.msk.f32.vlgmr.msra.gmra.mxu0 %vm28_vm0, %v16_v5  ;;  %501 = vmatprep.subr.mxu0 %v548_v6 }
   0xb   :  { %503 = vmatprep.mubr.msk.f32.mxu0 %vm549_vm1, %v548_v6  ;;  %p533_p3 = por %p532_p2, %p531_p1 }
   0xd   :  { %p534_p4 = pnand %p533_p3, %p527_p0 }
  0xca   :  { %v490_v7 = vpop.f32.mrf.mxu0 }
  0xcb   :  { %v107_v11 = vadd.f32 %v490_v7, %v457_v8 }
  0xcc   :  { %v101_v9 = vpop.f32.mrf.mxu0 }
  0xcd   :  { %v102_v10 = vadd.f32 %v457_v8, %v101_v9 }
  0xcf   :  { %111 = vrot.lane.b32.xlu0 %v102_v10, %s550_s25 }
  0xd3   :  { %189 = vrot.lane.b32.xlu0 %v107_v11, %s550_s25 }
 0x141   :  { %v112_v12 = vpop.permute.xlu0 %111 }
 0x142   :  { %492 = vmatpush3.xpose.msk.msra.mxu1 %vm113_vm2, %v112_v12 }
 0x143   :  { %496 = vmatprep.subr.mxu1 %v548_v6 }
 0x145   :  { %494 = vmatmul.mubr.msk.f32.vlgmr.msra.gmra.mxu1 %vm113_vm2, %v102_v10  ;;  %v190_v13 = vpop.permute.xlu0 %189 }
 0x146   :  { %497 = vmatpush3.xpose.msk.msra.mxu1 %vm113_vm2, %v190_v13  ;;  %498 = vmatprep.mubr.msk.f32.mxu1 %vm549_vm1, %v548_v6 }
 0x147   :  { %506 = vmatprep.subr.mxu1 %v548_v6 }
 0x149   :  { %499 = vmatmul.mubr.msk.f32.vlgmr.msra.gmra.mxu1 %vm113_vm2, %v107_v11 }
 0x14a   :  { %508 = vmatprep.mubr.msk.f32.mxu1 %vm549_vm1, %v548_v6 }
 0x205   :  { %v184_v14 = vpop.f32.mrf.mxu1 }
 0x206   :  { %v265_v15 = vsel %vm113_vm2, %v184_v14, -inf }
 0x207   :  { %266 = vmax.xlane.f32.xlu1 %v265_v15  ;;  %v495_v16 = vpop.f32.mrf.mxu1 }
 0x209   :  { %v261_v17 = vpop.f32.mrf.mxu1 }
 0x20a   :  { %v268_v18 = vsel %vm113_vm2, %v261_v17, -inf }
 0x20b   :  { %269 = vmax.xlane.f32.xlu1 %v268_v18  ;;  %v500_v19 = vpop.f32.mrf.mxu1 }
 0x21c   :  { %287 = vrot.lane.b32.xlu1 %v102_v10, %s551_s0 }
 0x290   :  { %v267_v20 = vpop.xlane.xlu1 %266 }
 0x291   :  { %v271_v21 = vsub.f32 %v184_v14, %v267_v20 }
 0x293   :  { %v273_v22 = vmul.f32 1.442695, %v271_v21 }
 0x294   :  { %v270_v23 = vpop.xlane.xlu1 %269 }
 0x295   :  { %518 = vpow2.f32 %v273_v22  ;;  %v272_v24 = vsub.f32 %v261_v17, %v270_v23 }
 0x297   :  { %v275_v25 = vmul.f32 1.442695, %v272_v24 }
 0x298   :  { %v288_v26 = vpop.permute.xlu1 %287 }
 0x299   :  { %520 = vpow2.f32 %v275_v25  ;;  %502 = vmatpush3.msra.mxu0 %v288_v26 }
 0x2a2   :  { %v519_v27 = vpop.eup %518 }
 0x2a3   :  { %v277_v28 = vsel %vm113_vm2, %v519_v27, 0.0 }
 0x2a4   :  { %278 = vadd.xlane.f32.xlu0 %v277_v28 }
 0x2a6   :  { %v521_v29 = vpop.eup %520 }
 0x2a7   :  { %v280_v30 = vsel %vm113_vm2, %v521_v29, 0.0 }
 0x2a8   :  { %281 = vadd.xlane.f32.xlu1 %v280_v30 }
 0x2b9   :  { %363 = vrot.lane.b32.xlu1 %v107_v11, %s551_s0 }
 0x32d   :  { %v279_v31 = vpop.xlane.xlu0 %278 }
 0x32e   :  { %522 = vrcp.f32 %v279_v31 }
 0x331   :  { %v282_v32 = vpop.xlane.xlu1 %281 }
 0x332   :  { %524 = vrcp.f32 %v282_v32 }
 0x335   :  { %v364_v33 = vpop.permute.xlu1 %363 }
 0x336   :  { %507 = vmatpush3.msra.mxu1 %v364_v33 }
 0x33b   :  { %v523_v34 = vpop.eup %522 }
 0x33c   :  { %v285_v35 = vmul.f32 %v523_v34, %v519_v27 }
 0x33e   :  { %504 = vmatmul.mubr.msk.f32.vlgmr.msra.gmra.mxu0 %vm113_vm2, %v285_v35 }
 0x33f   :  { %v525_v36 = vpop.eup %524 }
 0x340   :  { %v286_v37 = vmul.f32 %v525_v36, %v521_v29 }
 0x342   :  { %509 = vmatmul.mubr.msk.f32.vlgmr.msra.gmra.mxu1 %vm113_vm2, %v286_v37 }
 0x3fe   :  { %v359_v38 = vpop.f32.mrf.mxu0 }
 0x3ff   :  { %439 = vst.msk [vmem:[#allocation2] sm:$0xff] %vm113_vm2, %v359_v38 }
 0x400   :  { %v505_v39 = vpop.f32.mrf.mxu0 }
 0x402   :  { %v435_v40 = vpop.f32.mrf.mxu1 }
 0x403   :  { %440 = vst.msk [vmem:[#allocation2 + $0x8] sm:$0xff] %vm113_vm2, %v435_v40 }
 0x404   :  { %v510_v41 = vpop.f32.mrf.mxu1 }
 0x405   :  { %537 = shalt.err (!%p534_p4)
}
 0x406   :  { %s553_s28 = smov 128   ;;  %s554_s29 = smov 8  }
 0x407   :  { %452 = dma.vmem_to_hbm [thread:$0]  %s447_s26, 256, %s618_s3, [#allocation3], %s553_s28, %s553_s28, %s554_s29  }
 0x408   :  { %546 = dma.done.wait [#allocation3], 256  }
 0x409   :  { %547 = vsyncadd [#allocation3], 4294967040 }
 0x40a   :  { %456 = vsyncpa [#allocation3], 1 }

</bundles_post_ra>
